<compile_context>
chip_gen: v6e
topology: v6e:2x2x1
jax: 0.10.0
libtpu: 0.0.40
codegen_flags: <defaults>
</compile_context>

<pallas_src>
import jax
import jax.numpy as jnp
from jax.experimental import pallas as pl
from jax.experimental.pallas import tpu as pltpu


def prediction_head_kernel(x_ref, w1_ref, b1_ref, w2_ref, b2_ref,
                           w3_ref, b3_ref, o_ref):
    # Cast to the weights' compute dtype (bf16) in-kernel: VALU has slack under
    # the MXU chain, and it halves the MXU input width.
    x = x_ref[...].astype(w1_ref.dtype)                           # [TB, H]

    # hidden_layer_1 + ReLU  (bf16 matmul, f32 accumulate / bias / ReLU)
    h1 = jnp.dot(x, w1_ref[...], preferred_element_type=jnp.float32)
    h1 = jnp.maximum(h1 + b1_ref[...], 0.0)                       # [TB, H] f32

    # hidden_layer_2 + ReLU
    h2 = jnp.dot(h1.astype(w2_ref.dtype), w2_ref[...],
                 preferred_element_type=jnp.float32)
    h2 = jnp.maximum(h2 + b2_ref[...], 0.0)                       # [TB, H] f32

    # output_layer (H -> 4), narrow but contiguous output store
    out = jnp.dot(h2.astype(w3_ref.dtype), w3_ref[...],
                  preferred_element_type=jnp.float32)
    o_ref[...] = (out + b3_ref[...]).astype(o_ref.dtype)          # [TB, 4]


def _round_up(n, m):
    return ((n + m - 1) // m) * m


def _vmem_cap_bytes():
    try:
        cap = int(pltpu.get_tpu_info().vmem_capacity_bytes)
        if cap > 0:
            return cap
    except Exception:
        pass
    return 64 << 20  # conservative fallback: v7x physical VMEM per TensorCore


def prepare_prediction_head_params(w1, b1, w2, b2, w3, b3,
                                   compute_dtype=jnp.bfloat16):
    """One-time cast/reshape of the parameters (hoisted out of per-call path)."""
    return (w1.astype(compute_dtype), b1.reshape(1, -1).astype(jnp.float32),
            w2.astype(compute_dtype), b2.reshape(1, -1).astype(jnp.float32),
            w3.astype(compute_dtype), b3.reshape(1, -1).astype(jnp.float32))


def prediction_head(x, params, *, block_b=512):
    """x: [B, H]; params: output of prepare_prediction_head_params."""
    w1, b1, w2, b2, w3, b3 = params
    B, H = x.shape
    O = w3.shape[1]
    out_dtype = x.dtype

    # Batch tile: aim for >= 4 grid steps (megacore + pipeline overlap), rows a
    # multiple of 16 where possible, never (much) larger than the batch itself.
    TB = min(block_b, max(16, _round_up(pl.cdiv(B, 4), 16)))
    TB = min(TB, _round_up(B, 8))
    grid = (pl.cdiv(B, TB),)

    x_spec = pl.BlockSpec((TB, H), lambda i: (i, 0))
    o_spec = pl.BlockSpec((TB, O), lambda i: (i, 0))
    # Constant index_map + single buffering: params DMA'd once, VMEM-resident,
    # no useless second pipeline buffer.
    const = lambda shape: pl.BlockSpec(shape, lambda i: (0, 0),
                                       pipeline_mode=pl.Buffered(1))

    # Generation-aware VMEM budget (request what we need, capped below physical).
    wb = jnp.dtype(w1.dtype).itemsize
    xb = jnp.dtype(x.dtype).itemsize
    ob = jnp.dtype(out_dtype).itemsize
    needed = (2 * TB * H * xb                 # double-buffered x tiles
              + 2 * TB * O * ob               # double-buffered output tiles
              + (2 * H * H + H * O) * wb      # single-buffered resident weights
              + (2 * H + O) * 4               # resident biases (f32)
              + 3 * TB * H * 4)               # f32 intermediates headroom
    cap = _vmem_cap_bytes() - (8 << 20)       # leave headroom for Mosaic scratch
    vmem_limit = int(max(min(2 * needed + (4 << 20), cap), 1 << 20))
    # TODO(synk): if resident bf16 weights ever exceed `cap` (H >= ~4096 on
    # v7x's 64 MiB VMEM), add a hidden-dim-tiled fallback (grid axis over H,
    # VMEM accumulator, pl.when init/finalize) instead of weight residency.

    return pl.pallas_call(
        prediction_head_kernel,
        out_shape=jax.ShapeDtypeStruct((B, O), out_dtype),
        grid=grid,
        in_specs=[
            x_spec,
            const((H, H)), const((1, H)),
            const((H, H)), const((1, H)),
            const((H, O)), const((1, O)),
        ],
        out_specs=o_spec,
        compiler_params=pltpu.CompilerParams(
            dimension_semantics=("parallel",),   # shard batch tiles across TCs
            vmem_limit_bytes=vmem_limit,
        ),
    )(x, w1, b1, w2, b2, w3, b3)


def _reference(x, w1, b1, w2, b2, w3, b3):
    h = jnp.maximum(x @ w1 + b1, 0.0)
    h = jnp.maximum(h @ w2 + b2, 0.0)
    return h @ w3 + b3


if __name__ == "__main__":
    key = jax.random.PRNGKey(0)
    B, H, O = 8, 32, 4

    keys = jax.random.split(key, 7)
    x = jax.random.normal(keys[0], (B, H), dtype=jnp.float32)

    # Deterministic parameter init (uniform, PyTorch Linear-style bounds).
    def init_linear(kw, kb, fan_in, fan_out):
        bound = 1.0 / jnp.sqrt(fan_in)
        w = jax.random.uniform(kw, (fan_in, fan_out), jnp.float32, -bound, bound)
        b = jax.random.uniform(kb, (fan_out,), jnp.float32, -bound, bound)
        return w, b

    w1, b1 = init_linear(keys[1], keys[2], H, H)
    w2, b2 = init_linear(keys[3], keys[4], H, H)
    w3, b3 = init_linear(keys[5], keys[6], H, O)

    params = prepare_prediction_head_params(w1, b1, w2, b2, w3, b3)

    # Small shape consistent with the module (single-tile grid).
    out = jax.block_until_ready(prediction_head(x, params))
    ref = _reference(x, w1, b1, w2, b2, w3, b3)
    assert out.shape == (B, O)
    # bf16 matmul inputs (f32 accumulation) => relaxed tolerance vs f32 ref.
    assert jnp.allclose(out, ref, atol=3e-2, rtol=3e-2)

    # Larger, non-divisible batch: exercises the multi-step pipelined grid and
    # the masked partial last block (no host-side padding anywhere).
    B2 = 300
    x2 = jax.random.normal(jax.random.PRNGKey(1), (B2, H), dtype=jnp.float32)
    out2 = jax.block_until_ready(prediction_head(x2, params))
    ref2 = _reference(x2, w1, b1, w2, b2, w3, b3)
    assert out2.shape == (B2, O)
    assert jnp.allclose(out2, ref2, atol=3e-2, rtol=3e-2)

    print("KERNEL_OK")
</pallas_src>

<mosaic_0001>
module attributes {stable_mosaic.version = 11 : i64} {
  func.func @prediction_head_kernel(%arg0: i32, %arg1: memref<8x32xf32, #tpu.memory_space<vmem>>, %arg2: memref<32x32xbf16, #tpu.memory_space<vmem>>, %arg3: memref<1x32xf32, #tpu.memory_space<vmem>>, %arg4: memref<32x32xbf16, #tpu.memory_space<vmem>>, %arg5: memref<1x32xf32, #tpu.memory_space<vmem>>, %arg6: memref<32x4xbf16, #tpu.memory_space<vmem>>, %arg7: memref<1x4xf32, #tpu.memory_space<vmem>>, %arg8: memref<8x4xf32, #tpu.memory_space<vmem>>) attributes {dimension_semantics = [#tpu.dimension_semantics<parallel>], iteration_bounds = array<i64: 1>, scalar_prefetch = 0 : i64, scratch_operands = 0 : i64, tpu.core_type = #tpu.core_type<tc>, window_params = [{transform_indices = @transform_0, window_bounds = array<i64: 8, 32>}, {pipeline_mode = #tpu.pipeline_mode<synchronous>, transform_indices = @transform_1, window_bounds = array<i64: 32, 32>}, {pipeline_mode = #tpu.pipeline_mode<synchronous>, transform_indices = @transform_2, window_bounds = array<i64: 1, 32>}, {pipeline_mode = #tpu.pipeline_mode<synchronous>, transform_indices = @transform_3, window_bounds = array<i64: 32, 32>}, {pipeline_mode = #tpu.pipeline_mode<synchronous>, transform_indices = @transform_4, window_bounds = array<i64: 1, 32>}, {pipeline_mode = #tpu.pipeline_mode<synchronous>, transform_indices = @transform_5, window_bounds = array<i64: 32, 4>}, {pipeline_mode = #tpu.pipeline_mode<synchronous>, transform_indices = @transform_6, window_bounds = array<i64: 1, 4>}, {transform_indices = @transform_7, window_bounds = array<i64: 8, 4>}]} {
    %c0 = arith.constant 0 : index
    %c0_0 = arith.constant 0 : index
    %0 = vector.load %arg1[%c0, %c0_0] : memref<8x32xf32, #tpu.memory_space<vmem>>, vector<8x32xf32>
    %1 = arith.truncf %0 : vector<8x32xf32> to vector<8x32xbf16>
    %c0_1 = arith.constant 0 : index
    %c0_2 = arith.constant 0 : index
    %2 = vector.load %arg2[%c0_1, %c0_2] : memref<32x32xbf16, #tpu.memory_space<vmem>>, vector<32x32xbf16>
    %cst = arith.constant dense<0.000000e+00> : vector<8x32xf32>
    %3 = tpu.matmul %1, %2, %cst {dimension_numbers = #tpu.dot_dimension_numbers<[1], [0], [0], [1], [0, 0, 1, 1], [], []>} : vector<8x32xbf16>, vector<32x32xbf16>, vector<8x32xf32> -> vector<8x32xf32>
    %c0_3 = arith.constant 0 : index
    %c0_4 = arith.constant 0 : index
    %4 = vector.load %arg3[%c0_3, %c0_4] : memref<1x32xf32, #tpu.memory_space<vmem>>, vector<1x32xf32>
    %5 = vector.broadcast %4 : vector<1x32xf32> to vector<8x32xf32>
    %6 = arith.addf %3, %5 : vector<8x32xf32>
    %cst_5 = arith.constant 0.000000e+00 : f32
    %7 = vector.broadcast %cst_5 : f32 to vector<8x32xf32>
    %8 = arith.maximumf %6, %7 : vector<8x32xf32>
    %9 = arith.truncf %8 : vector<8x32xf32> to vector<8x32xbf16>
    %c0_6 = arith.constant 0 : index
    %c0_7 = arith.constant 0 : index
    %10 = vector.load %arg4[%c0_6, %c0_7] : memref<32x32xbf16, #tpu.memory_space<vmem>>, vector<32x32xbf16>
    %cst_8 = arith.constant dense<0.000000e+00> : vector<8x32xf32>
    %11 = tpu.matmul %9, %10, %cst_8 {dimension_numbers = #tpu.dot_dimension_numbers<[1], [0], [0], [1], [0, 0, 1, 1], [], []>} : vector<8x32xbf16>, vector<32x32xbf16>, vector<8x32xf32> -> vector<8x32xf32>
    %c0_9 = arith.constant 0 : index
    %c0_10 = arith.constant 0 : index
    %12 = vector.load %arg5[%c0_9, %c0_10] : memref<1x32xf32, #tpu.memory_space<vmem>>, vector<1x32xf32>
    %13 = vector.broadcast %12 : vector<1x32xf32> to vector<8x32xf32>
    %14 = arith.addf %11, %13 : vector<8x32xf32>
    %cst_11 = arith.constant 0.000000e+00 : f32
    %15 = vector.broadcast %cst_11 : f32 to vector<8x32xf32>
    %16 = arith.maximumf %14, %15 : vector<8x32xf32>
    %17 = arith.truncf %16 : vector<8x32xf32> to vector<8x32xbf16>
    %c0_12 = arith.constant 0 : index
    %c0_13 = arith.constant 0 : index
    %18 = vector.load %arg6[%c0_12, %c0_13] : memref<32x4xbf16, #tpu.memory_space<vmem>>, vector<32x4xbf16>
    %cst_14 = arith.constant dense<0.000000e+00> : vector<8x4xf32>
    %19 = tpu.matmul %17, %18, %cst_14 {dimension_numbers = #tpu.dot_dimension_numbers<[1], [0], [0], [1], [0, 0, 1, 1], [], []>} : vector<8x32xbf16>, vector<32x4xbf16>, vector<8x4xf32> -> vector<8x4xf32>
    %c0_15 = arith.constant 0 : index
    %c0_16 = arith.constant 0 : index
    %20 = vector.load %arg7[%c0_15, %c0_16] : memref<1x4xf32, #tpu.memory_space<vmem>>, vector<1x4xf32>
    %21 = vector.broadcast %20 : vector<1x4xf32> to vector<8x4xf32>
    %22 = arith.addf %19, %21 : vector<8x4xf32>
    %c0_17 = arith.constant 0 : index
    %c0_18 = arith.constant 0 : index
    %23 = vector.load %arg8[%c0_17, %c0_18] : memref<8x4xf32, #tpu.memory_space<vmem>>, vector<8x4xf32>
    tpu.vector_store %arg8[%c0_17, %c0_18], %22 {strides = array<i32>} : memref<8x4xf32, #tpu.memory_space<vmem>>, vector<8x4xf32>,
    return
  }
  func.func @transform_0(%arg0: i32) -> (i32, i32) {
    %c0_i32 = arith.constant 0 : i32
    %c0_i32_0 = arith.constant 0 : i32
    return %arg0, %c0_i32 : i32, i32
  }
  func.func @transform_1(%arg0: i32) -> (i32, i32) {
    %c0_i32 = arith.constant 0 : i32
    %c0_i32_0 = arith.constant 0 : i32
    %c0_i32_1 = arith.constant 0 : i32
    return %c0_i32, %c0_i32_0 : i32, i32
  }
  func.func @transform_2(%arg0: i32) -> (i32, i32) {
    %c0_i32 = arith.constant 0 : i32
    %c0_i32_0 = arith.constant 0 : i32
    %c0_i32_1 = arith.constant 0 : i32
    return %c0_i32, %c0_i32_0 : i32, i32
  }
  func.func @transform_3(%arg0: i32) -> (i32, i32) {
    %c0_i32 = arith.constant 0 : i32
    %c0_i32_0 = arith.constant 0 : i32
    %c0_i32_1 = arith.constant 0 : i32
    return %c0_i32, %c0_i32_0 : i32, i32
  }
  func.func @transform_4(%arg0: i32) -> (i32, i32) {
    %c0_i32 = arith.constant 0 : i32
    %c0_i32_0 = arith.constant 0 : i32
    %c0_i32_1 = arith.constant 0 : i32
    return %c0_i32, %c0_i32_0 : i32, i32
  }
  func.func @transform_5(%arg0: i32) -> (i32, i32) {
    %c0_i32 = arith.constant 0 : i32
    %c0_i32_0 = arith.constant 0 : i32
    %c0_i32_1 = arith.constant 0 : i32
    return %c0_i32, %c0_i32_0 : i32, i32
  }
  func.func @transform_6(%arg0: i32) -> (i32, i32) {
    %c0_i32 = arith.constant 0 : i32
    %c0_i32_0 = arith.constant 0 : i32
    %c0_i32_1 = arith.constant 0 : i32
    return %c0_i32, %c0_i32_0 : i32, i32
  }
  func.func @transform_7(%arg0: i32) -> (i32, i32) {
    %c0_i32 = arith.constant 0 : i32
    %c0_i32_0 = arith.constant 0 : i32
    return %arg0, %c0_i32 : i32, i32
  }
}

</mosaic_0001>

<bundles_post_ra>
// kernel: tpu_custom_call.1
= control target key start
LH: loop header
LB: loop body
LE: loop exit
PB: predicated region body
PF: predicated region fallthrough
CT: control target
= control target key end

     0   :  { %12 = vsyncpa [#allocation3], 0  ;;  %s446_s0 = inlined_call_operand.hbm [shape: f32[8,32], index: 0, kind: input, shape index: {}]   ;;  %s447_s1 = inlined_call_operand.vmem [shape: bf16[32,32], index: 1, kind: input, shape index: {}]   ;;  %s448_s2 = inlined_call_operand.vmem [shape: f32[1,32], index: 2, kind: input, shape index: {}]   ;;  %s449_s3 = inlined_call_operand.hbm [shape: bf16[32,32], index: 3, kind: input, shape index: {}]   ;;  %s450_s4 = inlined_call_operand.vmem [shape: f32[1,32], index: 4, kind: input, shape index: {}]   ;;  %s451_s5 = inlined_call_operand.vmem [shape: bf16[32,4], index: 5, kind: input, shape index: {}]   ;;  %s452_s6 = inlined_call_operand.vmem [shape: f32[1,4], index: 6, kind: input, shape index: {}]   ;;  %s453_s7 = inlined_call_operand.vmem [shape: f32[8,4], index: 7, kind: output, shape index: {}]  }
   0x1   :  { %13 = vsyncpa [#allocation5], 0  ;;  %s367_s24 = smov [#allocation2]   ;;  %s368_s26 = smov [#allocation4]  }
   0x2   :  { %s20_s25 = sshll.u32 %s367_s24, 4  ;;  %s33_s27 = sshll.u32 %s368_s26, 4  ;;  %s21_s25 = int_to_ptr.vmem [resolvable:$true] %s20_s25  ;;  %s34_s27 = int_to_ptr.vmem [resolvable:$true] %s33_s27 }
   0x3   :  { %s331_s28 = scalar_lea.vmem %s21_s25, 128  ;;  %p336_p1 = scmp.lt.s32.totalorder %s21_s25, %s21_s25 }
   0x4   :  { %p332_p0 = scmp.ne.s32.totalorder %s21_s25, %s331_s28  ;;  %p337_p2 = scmp.lt.s32.totalorder %s331_s28, %s331_s28 }
   0x6   :  { %p338_p3 = por %p337_p2, %p336_p1 }
   0x8   :  { %p339_p4 = pnand %p338_p3, %p332_p0 }
   0xa   :  { %342 = shalt.err (!%p339_p4)
}
   0xb   :  { %23 = dma.hbm_to_vmem [thread:$0]  %s446_s0, 128, %s21_s25, [#allocation3]  }
   0xc   :  { %s351_s8 = scalar_lea.vmem %s34_s27, 256  ;;  %p356_p6 = scmp.lt.s32.totalorder %s34_s27, %s34_s27 }
   0xd   :  { %p352_p5 = scmp.ne.s32.totalorder %s34_s27, %s351_s8  ;;  %p357_p7 = scmp.lt.s32.totalorder %s351_s8, %s351_s8 }
   0xf   :  { %p358_p8 = por %p357_p7, %p356_p6 }
  0x11   :  { %p359_p9 = pnand %p358_p8, %p352_p5 }
  0x13   :  { %362 = shalt.err (!%p359_p9)
}
  0x14   :  { %s369_s9 = smov 64   ;;  %s370_s10 = smov 4  }
  0x15   :  { %39 = dma.hbm_to_vmem [thread:$0]  %s449_s3, 256, %s34_s27, [#allocation5], %s369_s9, %s369_s9, %s370_s10  }
  0x16   :  { %363 = dma.done.wait [#allocation3], 128  }
  0x17   :  { %364 = vsyncadd [#allocation3], 4294967168 }
  0x18   :  { %365 = dma.done.wait [#allocation5], 256  }
  0x19   :  { %366 = vsyncadd [#allocation5], 4294967040  ;;  %v371_v0 = vmov 0.0   ;;  %vm372_vm0 = vmmov 0   ;;  %v317_v1 = vld [vmem:[%s447_s1 + $0x8] sm:$0xff]   ;;  %v318_v2 = vld [vmem:[%s447_s1] sm:$0xff]  }
  0x1a   :  { %287 = vmatprep.subr.bf16.mxu0 %v371_v0  ;;  %291 = vmatprep.mubr.msk.bf16.mxu0 %vm372_vm0, %v371_v0  ;;  %v53_v3 = vld [vmem:[#allocation2] sm:$0xff]  ;;  %vm78_vm1 = vcmask 261120   ;;  %v319_v5 = vld [vmem:[#allocation4 + $0x8] sm:$0xff]   ;;  %v320_v6 = vld [vmem:[#allocation4] sm:$0xff]   ;;  %vm258_vm2 = vcmask 31744  }
  0x1b   :  { %295 = vmatprep.subr.bf16.mxu1 %v371_v0  ;;  %299 = vmatprep.mubr.msk.bf16.mxu1 %vm372_vm0, %v371_v0  ;;  %v54_v4 = vpack.c.bf16 %v53_v3, %v53_v3  ;;  %v321_v7 = vld [vmem:[%s451_s5 + $0x8] sm:$0xff]   ;;  %v266_v8 = vld [vmem:[%s448_s2] ss:$0 sm:$0xff] }
  0x1c   :  { %288 = vmatpush3.bf16.msra.mxu0 %v317_v1  ;;  %296 = vmatpush3.bf16.msra.mxu1 %v319_v5  ;;  %v322_v16 = vld [vmem:[%s451_s5] sm:$0xff]  }
  0x1d   :  { %289 = vmatprep.subr.bf16.mxu0 %v371_v0  ;;  %297 = vmatprep.subr.bf16.mxu1 %v371_v0  ;;  %v270_v17 = vld [vmem:[%s450_s4] ss:$0 sm:$0xff] }
  0x1e   :  { %v274_v25 = vld [vmem:[%s452_s6] ss:$0 sm:$0xff] }
  0x20   :  { %290 = vmatpush3.bf16.msra.mxu0 %v318_v2  ;;  %298 = vmatpush3.bf16.msra.mxu1 %v320_v6 }
  0x21   :  { %303 = vmatprep.subr.bf16.mxu0 %v371_v0 }
  0x23   :  { %292 = vmatmul.mubr.msk.bf16.vlgmr.msra.gmra.mxu0 %vm78_vm1, %v54_v4 }
  0x24   :  { %307 = vmatprep.mubr.msk.bf16.mxu0 %vm372_vm0, %v371_v0  ;;  %304 = vmatpush3.bf16.msra.mxu0 %v321_v7 }
  0x25   :  { %305 = vmatprep.subr.bf16.mxu0 %v371_v0 }
  0x28   :  { %306 = vmatpush3.bf16.msra.mxu0 %v322_v16 }
  0xe3   :  { %v116_v9 = vpop.f32.mrf.mxu0 }
  0xe4   :  { %v117_v10 = vadd.f32 %v266_v8, %v116_v9 }
  0xe5   :  { %v293_v11 = vpop.f32.mrf.mxu0 }
  0xe6   :  { %v122_v12 = vmax.f32 %v117_v10, 0.0 }
  0xe7   :  { %v119_v13 = vpop.f32.mrf.mxu0 }
  0xe8   :  { %v123_v14 = vpack.c.bf16 %v122_v12, %v122_v12 }
  0xe9   :  { %v294_v15 = vpop.f32.mrf.mxu0 }
  0xea   :  { %300 = vmatmul.mubr.msk.bf16.vlgmr.msra.gmra.mxu1 %vm78_vm1, %v123_v14 }
 0x1aa   :  { %v184_v18 = vpop.f32.mrf.mxu1 }
 0x1ab   :  { %v185_v19 = vadd.f32 %v270_v17, %v184_v18 }
 0x1ac   :  { %v301_v20 = vpop.f32.mrf.mxu1 }
 0x1ad   :  { %v190_v21 = vmax.f32 %v185_v19, 0.0 }
 0x1ae   :  { %v187_v22 = vpop.f32.mrf.mxu1 }
 0x1af   :  { %v191_v23 = vpack.c.bf16 %v190_v21, %v190_v21 }
 0x1b0   :  { %v302_v24 = vpop.f32.mrf.mxu1 }
 0x1b1   :  { %308 = vmatmul.mubr.msk.bf16.vlgmr.msra.gmra.mxu0 %vm78_vm1, %v191_v23 }
 0x271   :  { %v252_v26 = vpop.f32.mrf.mxu0 }
 0x272   :  { %v253_v27 = vadd.f32 %v274_v25, %v252_v26 }
 0x273   :  { %v309_v28 = vpop.f32.mrf.mxu0 }
 0x274   :  { %259 = vst.msk [vmem:[%s453_s7] sm:$0xff] %vm258_vm2, %v253_v27 }
 0x275   :  { %v255_v29 = vpop.f32.mrf.mxu0 }
 0x277   :  { %v310_v30 = vpop.f32.mrf.mxu0 }
 0x278   :  { %264 = vsyncpa [#allocation3], 1 }
 0x279   :  { %265 = vsyncpa [#allocation5], 1 }

</bundles_post_ra>
